<compile_context>
chip_gen: v5e
topology: v5e:2x2
jax: 0.10.0
libtpu: 0.0.40
codegen_flags: <defaults>
</compile_context>

<pallas_src>
import jax
import jax.numpy as jnp
from jax.experimental import pallas as pl
from jax.experimental.pallas import tpu as pltpu


LANE = 128  # lane width: pad depth / leaf / class dims to a multiple of this


def _round_up(n, m):
    return ((n + m - 1) // m) * m


def odt_kernel(x_ref, sel_ref, thr_ref, pow2_ref, leaf_ids_ref, resp_ref, out_ref):
    x = x_ref[...]                                                        # (TB, F) f32
    # Select the argmax feature per depth level via one-hot matmul (exact).
    vals = jnp.dot(x, sel_ref[...], preferred_element_type=jnp.float32)  # (TB, Dp)
    # Padded depth columns: vals == 0 and thr == +inf -> bit == 0.
    bits = (vals > thr_ref[...]).astype(jnp.int32)                       # (TB, Dp)
    # decision = decision*2 + bit  ==  sum_d bit_d * 2^(depth-1-d)   (int32, exact)
    leaf_idx = jnp.sum(bits * pow2_ref[...], axis=-1, keepdims=True)     # (TB, 1)
    # Padded leaf ids are -1 so they never match (leaf_idx >= 0).
    onehot = (leaf_idx == leaf_ids_ref[...]).astype(jnp.float32)         # (TB, Lp)
    # Gather responses[leaf] as a one-hot matmul; output is lane-dense (TB, Cp).
    out_ref[...] = jnp.dot(onehot, resp_ref[...],
                           preferred_element_type=jnp.float32)


def oblivious_decision_tree(x, feature_weights, thresholds, responses, *, tb=1024):
    depth, num_features = feature_weights.shape
    num_leaves, num_classes = responses.shape
    batch = x.shape[0]
    assert num_leaves == 2 ** depth
    assert depth <= LANE, "depth must fit in one lane-padded vector"

    # ---- parameter-only glue (pure JAX, tiny) --------------------------------
    dp = _round_up(depth, LANE)        # padded depth lanes
    lp = _round_up(num_leaves, LANE)   # padded leaf lanes
    cp = _round_up(num_classes, LANE)  # padded class lanes (lane-dense output)

    feat_idx = jnp.argmax(feature_weights, axis=1)                        # (depth,)
    sel = jax.nn.one_hot(feat_idx, num_features, dtype=jnp.float32).T     # (F, depth)
    sel = jnp.pad(sel, ((0, 0), (0, dp - depth)))                         # (F, Dp)
    thr = jnp.pad(thresholds.astype(jnp.float32), (0, dp - depth),
                  constant_values=jnp.inf).reshape(1, dp)                 # (1, Dp)
    pow2 = jnp.pad(2 ** jnp.arange(depth - 1, -1, -1, dtype=jnp.int32),
                   (0, dp - depth)).reshape(1, dp)                        # (1, Dp)
    leaf_ids = jnp.pad(jnp.arange(num_leaves, dtype=jnp.int32),
                       (0, lp - num_leaves),
                       constant_values=-1).reshape(1, lp)                 # (1, Lp)
    resp = jnp.pad(responses.astype(jnp.float32),
                   ((0, lp - num_leaves), (0, cp - num_classes)))         # (Lp, Cp)

    # ---- batch tiling ---------------------------------------------------------
    if batch < tb:
        tb = max(8, _round_up(batch, 8))
    batch_padded = _round_up(batch, tb)
    x_f32 = x.astype(jnp.float32)
    if batch_padded != batch:
        x_f32 = jnp.pad(x_f32, ((0, batch_padded - batch), (0, 0)))
    grid = (batch_padded // tb,)

    const2d = lambda i: (0, 0)  # parameters resident across the whole grid
    out_padded = pl.pallas_call(
        odt_kernel,
        out_shape=jax.ShapeDtypeStruct((batch_padded, cp), jnp.float32),
        grid=grid,
        in_specs=[
            pl.BlockSpec((tb, num_features), lambda i: (i, 0)),   # x: streamed
            pl.BlockSpec((num_features, dp), const2d),            # sel (one-hot)
            pl.BlockSpec((1, dp), const2d),                       # thresholds
            pl.BlockSpec((1, dp), const2d),                       # pow2
            pl.BlockSpec((1, lp), const2d),                       # leaf ids
            pl.BlockSpec((lp, cp), const2d),                      # responses
        ],
        out_specs=pl.BlockSpec((tb, cp), lambda i: (i, 0)),
        compiler_params=pltpu.CompilerParams(
            dimension_semantics=("parallel",),   # shards batch across TCs on v7x
            vmem_limit_bytes=64 * 1024 * 1024,
        ),
    )(x_f32, sel, thr, pow2, leaf_ids, resp)

    return out_padded[:batch, :num_classes]


def _reference(x, feature_weights, thresholds, responses):
    # Pure-JAX reference mirroring the PyTorch forward exactly.
    depth = feature_weights.shape[0]
    decision = jnp.zeros((x.shape[0],), dtype=jnp.float32)
    for d in range(depth):
        fidx = jnp.argmax(feature_weights[d])
        fval = x[:, fidx]
        bit = (fval > thresholds[d]).astype(jnp.float32)
        decision = decision * 2.0 + bit
    return responses[decision.astype(jnp.int32)]


if __name__ == "__main__":
    num_features = 16
    num_classes = 3
    depth = 4
    batch = 8

    key = jax.random.PRNGKey(0)
    k_x, k_w, k_t, k_r = jax.random.split(key, 4)

    x = jax.random.normal(k_x, (batch, num_features), dtype=jnp.float32)
    feature_weights = jax.random.normal(k_w, (depth, num_features), dtype=jnp.float32)
    thresholds = jax.random.normal(k_t, (depth,), dtype=jnp.float32)
    responses = jax.random.normal(k_r, (2 ** depth, num_classes), dtype=jnp.float32)

    out = oblivious_decision_tree(x, feature_weights, thresholds, responses)
    out = jax.block_until_ready(out)

    ref = _reference(x, feature_weights, thresholds, responses)
    assert out.shape == (batch, num_classes)
    assert jnp.allclose(out, ref, atol=1e-6), "mismatch vs reference"

    print("KERNEL_OK")
</pallas_src>

<mosaic_0001>
module attributes {stable_mosaic.version = 11 : i64} {
  func.func @odt_kernel(%arg0: i32, %arg1: memref<8x16xf32, #tpu.memory_space<vmem>>, %arg2: memref<16x128xf32, #tpu.memory_space<vmem>>, %arg3: memref<1x128xf32, #tpu.memory_space<vmem>>, %arg4: memref<1x128xi32, #tpu.memory_space<vmem>>, %arg5: memref<1x128xi32, #tpu.memory_space<vmem>>, %arg6: memref<128x128xf32, #tpu.memory_space<vmem>>, %arg7: memref<8x128xf32, #tpu.memory_space<vmem>>) attributes {dimension_semantics = [#tpu.dimension_semantics<parallel>], iteration_bounds = array<i64: 1>, scalar_prefetch = 0 : i64, scratch_operands = 0 : i64, tpu.core_type = #tpu.core_type<tc>, window_params = [{transform_indices = @transform_0, window_bounds = array<i64: 8, 16>}, {pipeline_mode = #tpu.pipeline_mode<synchronous>, transform_indices = @transform_1, window_bounds = array<i64: 16, 128>}, {pipeline_mode = #tpu.pipeline_mode<synchronous>, transform_indices = @transform_2, window_bounds = array<i64: 1, 128>}, {pipeline_mode = #tpu.pipeline_mode<synchronous>, transform_indices = @transform_3, window_bounds = array<i64: 1, 128>}, {pipeline_mode = #tpu.pipeline_mode<synchronous>, transform_indices = @transform_4, window_bounds = array<i64: 1, 128>}, {pipeline_mode = #tpu.pipeline_mode<synchronous>, transform_indices = @transform_5, window_bounds = array<i64: 128, 128>}, {transform_indices = @transform_6, window_bounds = array<i64: 8, 128>}]} {
    %c0 = arith.constant 0 : index
    %c0_0 = arith.constant 0 : index
    %0 = vector.load %arg1[%c0, %c0_0] : memref<8x16xf32, #tpu.memory_space<vmem>>, vector<8x16xf32>
    %c0_1 = arith.constant 0 : index
    %c0_2 = arith.constant 0 : index
    %1 = vector.load %arg2[%c0_1, %c0_2] : memref<16x128xf32, #tpu.memory_space<vmem>>, vector<16x128xf32>
    %cst = arith.constant dense<0.000000e+00> : vector<8x128xf32>
    %2 = tpu.matmul %0, %1, %cst {dimension_numbers = #tpu.dot_dimension_numbers<[1], [0], [0], [1], [0, 0, 1, 1], [], []>} : vector<8x16xf32>, vector<16x128xf32>, vector<8x128xf32> -> vector<8x128xf32>
    %c0_3 = arith.constant 0 : index
    %c0_4 = arith.constant 0 : index
    %3 = vector.load %arg3[%c0_3, %c0_4] : memref<1x128xf32, #tpu.memory_space<vmem>>, vector<1x128xf32>
    %4 = vector.broadcast %3 : vector<1x128xf32> to vector<8x128xf32>
    %5 = arith.cmpf ogt, %2, %4 : vector<8x128xf32>
    %6 = arith.extui %5 : vector<8x128xi1> to vector<8x128xi32>
    %c0_5 = arith.constant 0 : index
    %c0_6 = arith.constant 0 : index
    %7 = vector.load %arg4[%c0_5, %c0_6] : memref<1x128xi32, #tpu.memory_space<vmem>>, vector<1x128xi32>
    %8 = vector.broadcast %7 : vector<1x128xi32> to vector<8x128xi32>
    %9 = arith.muli %6, %8 : vector<8x128xi32>
    %cst_7 = arith.constant dense<0> : vector<8xi32>
    %10 = vector.multi_reduction <add>, %9, %cst_7 [1] : vector<8x128xi32> to vector<8xi32>
    %11 = vector.shape_cast %10 : vector<8xi32> to vector<8x1xi32>
    %c0_8 = arith.constant 0 : index
    %c0_9 = arith.constant 0 : index
    %12 = vector.load %arg5[%c0_8, %c0_9] : memref<1x128xi32, #tpu.memory_space<vmem>>, vector<1x128xi32>
    %13 = vector.broadcast %11 : vector<8x1xi32> to vector<8x128xi32>
    %14 = vector.broadcast %12 : vector<1x128xi32> to vector<8x128xi32>
    %15 = arith.cmpi eq, %13, %14 : vector<8x128xi32>
    %16 = arith.extui %15 : vector<8x128xi1> to vector<8x128xi32>
    %17 = arith.sitofp %16 : vector<8x128xi32> to vector<8x128xf32>
    %c0_10 = arith.constant 0 : index
    %c0_11 = arith.constant 0 : index
    %18 = vector.load %arg6[%c0_10, %c0_11] : memref<128x128xf32, #tpu.memory_space<vmem>>, vector<128x128xf32>
    %cst_12 = arith.constant dense<0.000000e+00> : vector<8x128xf32>
    %19 = tpu.matmul %17, %18, %cst_12 {dimension_numbers = #tpu.dot_dimension_numbers<[1], [0], [0], [1], [0, 0, 1, 1], [], []>} : vector<8x128xf32>, vector<128x128xf32>, vector<8x128xf32> -> vector<8x128xf32>
    %c0_13 = arith.constant 0 : index
    %c0_14 = arith.constant 0 : index
    %20 = vector.load %arg7[%c0_13, %c0_14] : memref<8x128xf32, #tpu.memory_space<vmem>>, vector<8x128xf32>
    tpu.vector_store %arg7[%c0_13, %c0_14], %19 {strides = array<i32>} : memref<8x128xf32, #tpu.memory_space<vmem>>, vector<8x128xf32>,
    return
  }
  func.func @transform_0(%arg0: i32) -> (i32, i32) {
    %c0_i32 = arith.constant 0 : i32
    %c0_i32_0 = arith.constant 0 : i32
    return %arg0, %c0_i32 : i32, i32
  }
  func.func @transform_1(%arg0: i32) -> (i32, i32) {
    %c0_i32 = arith.constant 0 : i32
    %c0_i32_0 = arith.constant 0 : i32
    %c0_i32_1 = arith.constant 0 : i32
    return %c0_i32, %c0_i32_0 : i32, i32
  }
  func.func @transform_2(%arg0: i32) -> (i32, i32) {
    %c0_i32 = arith.constant 0 : i32
    %c0_i32_0 = arith.constant 0 : i32
    %c0_i32_1 = arith.constant 0 : i32
    return %c0_i32, %c0_i32_0 : i32, i32
  }
  func.func @transform_3(%arg0: i32) -> (i32, i32) {
    %c0_i32 = arith.constant 0 : i32
    %c0_i32_0 = arith.constant 0 : i32
    %c0_i32_1 = arith.constant 0 : i32
    return %c0_i32, %c0_i32_0 : i32, i32
  }
  func.func @transform_4(%arg0: i32) -> (i32, i32) {
    %c0_i32 = arith.constant 0 : i32
    %c0_i32_0 = arith.constant 0 : i32
    %c0_i32_1 = arith.constant 0 : i32
    return %c0_i32, %c0_i32_0 : i32, i32
  }
  func.func @transform_5(%arg0: i32) -> (i32, i32) {
    %c0_i32 = arith.constant 0 : i32
    %c0_i32_0 = arith.constant 0 : i32
    %c0_i32_1 = arith.constant 0 : i32
    return %c0_i32, %c0_i32_0 : i32, i32
  }
  func.func @transform_6(%arg0: i32) -> (i32, i32) {
    %c0_i32 = arith.constant 0 : i32
    %c0_i32_0 = arith.constant 0 : i32
    return %arg0, %c0_i32 : i32, i32
  }
}

</mosaic_0001>

<bundles_post_ra>
// kernel: tpu_custom_call.1
= control target key start
LH: loop header
LB: loop body
LE: loop exit
PB: predicated region body
PF: predicated region fallthrough
CT: control target
= control target key end

     0   :  { %11 = vsyncpa [#allocation3], 0  ;;  %s357_s0 = inlined_call_operand.hbm [shape: f32[8,16], index: 0, kind: input, shape index: {}]   ;;  %s358_s1 = inlined_call_operand.hbm [shape: f32[16,128], index: 1, kind: input, shape index: {}]   ;;  %s359_s2 = inlined_call_operand.vmem [shape: f32[1,128], index: 2, kind: input, shape index: {}]   ;;  %s360_s3 = inlined_call_operand.vmem [shape: s32[1,128], index: 3, kind: input, shape index: {}]   ;;  %s361_s4 = inlined_call_operand.vmem [shape: s32[1,128], index: 4, kind: input, shape index: {}]   ;;  %s362_s5 = inlined_call_operand.hbm [shape: f32[128,128], index: 5, kind: input, shape index: {}]   ;;  %s363_s6 = inlined_call_operand.hbm [shape: f32[8,128], index: 6, kind: output, shape index: {}]  }
   0x1   :  { %12 = vsyncpa [#allocation6], 0  ;;  %s29_s23 = sshll.u32 %s358_s1, 4  ;;  %s30_s23 = int_to_ptr.hbm [resolvable:$true] %s29_s23 }
   0x2   :  { %13 = vsyncpa [#allocation4], 0  ;;  %s293_s24 = smov [#allocation5]   ;;  %s19_s28 = sshll.u32 %s357_s0, 4  ;;  %s20_s28 = int_to_ptr.hbm [resolvable:$true] %s19_s28 }
   0x3   :  { %s31_s25 = sshll.u32 %s293_s24, 4  ;;  %s294_s29 = smov 128   ;;  %s32_s25 = int_to_ptr.vmem [resolvable:$true] %s31_s25 }
   0x4   :  { %s295_s30 = smov 8   ;;  %s296_s7 = smov [#allocation2]  }
   0x5   :  { %37 = dma.hbm_to_vmem [thread:$0]  %s30_s23, 256, %s32_s25, [#allocation6], %s294_s29, %s294_s29, %s295_s30  }
   0x6   :  { %s21_s8 = sshll.u32 %s296_s7, 4  ;;  %s48_s11 = sshll.u32 %s362_s5, 4  ;;  %s22_s8 = int_to_ptr.vmem [resolvable:$true] %s21_s8  ;;  %s49_s11 = int_to_ptr.hbm [resolvable:$true] %s48_s11 }
   0x7   :  { %24 = dma.hbm_to_vmem [thread:$0]  %s20_s28, 128, %s22_s8, [#allocation3]  }
   0x8   :  { %s297_s1 = smov [#allocation7]  }
   0x9   :  { %s50_s12 = sshll.u32 %s297_s1, 4  ;;  %s51_s12 = int_to_ptr.vmem [resolvable:$true] %s50_s12 }
   0xa   :  { %56 = dma.hbm_to_vmem [thread:$0]  %s49_s11, 2048, %s51_s12, [#allocation6], %s294_s29, %s294_s29, %s295_s30  }
   0xb   :  { %287 = dma.done.wait [#allocation3], 128  }
   0xc   :  { %288 = vsyncadd [#allocation3], 4294967168 }
   0xd   :  { %289 = dma.done.wait [#allocation6], 2304  }
   0xe   :  { %290 = vsyncadd [#allocation6], 4294964992  ;;  %v71_v0 = vld [vmem:[#allocation5 + $0x8] sm:$0xff]  ;;  %v70_v1 = vld [vmem:[#allocation5] sm:$0xff]  ;;  %vm72_vm0 = vcmask 130048   ;;  %v298_v15 = vmov 0  }
   0xf   :  { %v69_v2 = vld [vmem:[#allocation2] sm:$0xff]  ;;  %90 = vmatpush.msra.mxu0 %v71_v0  ;;  %v137_v3 = vld [vmem:[#allocation7 + $0x78] sm:$0xff]  ;;  %v136_v4 = vld [vmem:[#allocation7 + $0x70] sm:$0xff]  ;;  %v299_v36 = vmov 1.0   ;;  %s300_s15 = smov [#allocation8]   ;;  %s166_s19 = sshll.u32 %s363_s6, 4  ;;  %s167_s19 = int_to_ptr.hbm [resolvable:$true] %s166_s19 }
  0x10   :  { %138 = vmatpush.msra.mxu1 %v137_v3  ;;  %v135_v5 = vld [vmem:[#allocation7 + $0x68] sm:$0xff]  ;;  %v134_v6 = vld [vmem:[#allocation7 + $0x60] sm:$0xff]  ;;  %v133_v7 = vld [vmem:[#allocation7 + $0x58] sm:$0xff]  ;;  %s164_s16 = sshll.u32 %s300_s15, 4  ;;  %s165_s16 = int_to_ptr.vmem [resolvable:$true] %s164_s16 }
  0x11   :  { %91 = vmatpush.msra.mxu0 %v70_v1  ;;  %v132_v8 = vld [vmem:[#allocation7 + $0x50] sm:$0xff]  ;;  %v131_v9 = vld [vmem:[#allocation7 + $0x48] sm:$0xff]  ;;  %v130_v11 = vld [vmem:[#allocation7 + $0x40] sm:$0xff] }
  0x12   :  { %177 = vmatmul.msk.f32.vlgmr.msra.gmra.mxu0 %vm72_vm0, %v69_v2  ;;  %139 = vmatpush.msra.mxu1 %v136_v4  ;;  %v188_v10 = vld [vmem:[%s359_s2] ss:$0 sm:$0xff]  ;;  %v129_v13 = vld [vmem:[#allocation7 + $0x38] sm:$0xff]  ;;  %v128_v22 = vld [vmem:[#allocation7 + $0x30] sm:$0xff] }
  0x13   :  { %v189_v12 = vld [vmem:[%s360_s3] ss:$0 sm:$0xff]  ;;  %v126_v24 = vld [vmem:[#allocation7 + $0x20] sm:$0xff]  ;;  %v125_v25 = vld [vmem:[#allocation7 + $0x18] sm:$0xff] }
  0x14   :  { %140 = vmatpush.msra.mxu1 %v135_v5  ;;  %v127_v23 = vld [vmem:[#allocation7 + $0x28] sm:$0xff]  ;;  %v124_v26 = vld [vmem:[#allocation7 + $0x10] sm:$0xff]  ;;  %v122_v28 = vld [vmem:[#allocation7] sm:$0xff] }
  0x15   :  { %v123_v27 = vld [vmem:[#allocation7 + $0x8] sm:$0xff] }
  0x16   :  { %141 = vmatpush.msra.mxu1 %v134_v6  ;;  %v190_v34 = vld [vmem:[%s361_s4] ss:$0 sm:$0xff] }
  0x18   :  { %142 = vmatpush.msra.mxu1 %v133_v7 }
  0x1a   :  { %143 = vmatpush.msra.mxu1 %v132_v8 }
  0x1c   :  { %144 = vmatpush.msra.mxu1 %v131_v9 }
  0x1e   :  { %145 = vmatpush.msra.mxu1 %v130_v11 }
  0x20   :  { %146 = vmatpush.msra.mxu1 %v129_v13 }
  0x22   :  { %147 = vmatpush.msra.mxu1 %v128_v22 }
  0x24   :  { %148 = vmatpush.msra.mxu1 %v127_v23 }
  0x26   :  { %149 = vmatpush.msra.mxu1 %v126_v24 }
  0x28   :  { %150 = vmatpush.msra.mxu1 %v125_v25 }
  0x2a   :  { %151 = vmatpush.msra.mxu1 %v124_v26 }
  0x2c   :  { %152 = vmatpush.msra.mxu1 %v123_v27 }
  0x2e   :  { %153 = vmatpush.msra.mxu1 %v122_v28 }
  0x8f   :  { %v93_v14 = vpop.f32.mrf.mxu0 }
  0x90   :  { %vm100_vm1 = vcmp.gt.f32.partialorder %v93_v14, %v188_v10 }
  0x91   :  { %v101_v16 = vsel %vm100_vm1, 1, %v298_v15 }
  0x92   :  { %v104_v17 = vmul.u32 %v189_v12, %v101_v16 }
  0x94   :  { %v106_v18 = vshrl.u32 %v104_v17, 16  ;;  %v105_v20 = vand.u32 65535, %v104_v17 }
  0x96   :  { %v108_v19 = vcvt.s32.f32 %v106_v18  ;;  %v107_v21 = vcvt.s32.f32 %v105_v20 }
  0x98   :  { %111 = vadd.xlane.f32.xlu0 %v108_v19 }
  0xa0   :  { %109 = vadd.xlane.f32.xlu0 %v107_v21 }
 0x10b   :  { %v112_v29 = vpop.xlane.xlu0 %111 }
 0x10c   :  { %v114_v30 = vcvt.f32.s32 %v112_v29 }
 0x10e   :  { %v115_v32 = vshll.u32 %v114_v30, 16 }
 0x113   :  { %v110_v31 = vpop.xlane.xlu0 %109 }
 0x114   :  { %v113_v33 = vcvt.f32.s32 %v110_v31 }
 0x116   :  { %v116_v35 = vadd.s32 %v115_v32, %v113_v33 }
 0x118   :  { %vm119_vm2 = vcmp.eq.s32.totalorder %v116_v35, %v190_v34 }
 0x119   :  { %179 = vmatmul.msk.f32.vlgmr.msra.gmra.mxu1 %vm119_vm2, %v299_v36 }
 0x196   :  { %v155_v37 = vpop.f32.mrf.mxu1 }
 0x197   :  { %158 = vst [vmem:[#allocation8] sm:$0xff] %v155_v37 }
 0x198   :  { %169 = dma.vmem_to_hbm [thread:$0]  %s165_s16, 128, %s167_s19, [#allocation4]  }
 0x199   :  { %291 = dma.done.wait [#allocation4], 128  }
 0x19a   :  { %292 = vsyncadd [#allocation4], 4294967168 }
 0x19b   :  { %174 = vsyncpa [#allocation3], 1 }
 0x19c   :  { %175 = vsyncpa [#allocation6], 1 }
 0x19d   :  { %176 = vsyncpa [#allocation4], 1 }

</bundles_post_ra>
